<compile_context>
chip_gen: v7x
topology: tpu7x:2x2x1
jax: 0.10.0
libtpu: 0.0.40
codegen_flags: <defaults>
</compile_context>

<pallas_src>
import math

import jax
import jax.numpy as jnp
from jax.experimental import pallas as pl
from jax.experimental.pallas import tpu as pltpu


_TWO_PI = 2.0 * math.pi


def _posemb_kernel(x_ref, w_ref, out_ref):
    """Fused [x | sin | cos] in a batch-on-lanes (transposed) layout.

    x_ref:   (1, BT)              f32   batch on the lane axis
    w_ref:   (half_dim, 1)        f32   resident weights
    out_ref: (2*half_dim + 1, BT) out dtype
    """
    half_dim = w_ref.shape[0]
    x = x_ref[...]                                 # (1, BT)
    # Fold the 2*pi scale into the tiny (half_dim, 1) weight column (VPU mul).
    w = w_ref[...] * _TWO_PI                       # (half_dim, 1)
    # Outer product as a VPU broadcast multiply -- NOT a K=1 MXU matmul.
    freqs = w * x                                  # (half_dim, BT), lane-dense
    out_ref[0:1, :] = x.astype(out_ref.dtype)                          # pass-through x row
    out_ref[1:1 + half_dim, :] = jnp.sin(freqs).astype(out_ref.dtype)  # lane-dense stores
    out_ref[1 + half_dim:, :] = jnp.cos(freqs).astype(out_ref.dtype)


def _round_up(v, m):
    return ((v + m - 1) // m) * m


def _pick_batch_tile(b, rows):
    """Lane-axis batch tile: multiple of 128, ~1 MiB output blocks, VMEM-capped,
    split into >=2 grid steps when the batch allows (v7x two TensorCores)."""
    b128 = _round_up(max(b, 1), 128)
    # ~1 MiB of fused output per grid step (per-step overhead ~0.35us).
    bt = max(128, ((1 << 20) // (rows * 4)) // 128 * 128)
    # Double-buffered fused output must stay well under the scoped VMEM limit
    # (v7x has only 64 MiB physical VMEM); keep outputs <= ~12 MiB.
    bt = min(bt, max(128, ((12 << 20) // (2 * rows * 4)) // 128 * 128))
    # At least 2 grid steps when possible so the "parallel" axis actually
    # shards across both v7x TCs / megacore.
    if b128 >= 256:
        bt = min(bt, max(128, (b128 // 2) // 128 * 128))
    return min(bt, b128)


def random_or_learned_sinusoidal_pos_emb(x, weights, *, out_dtype=jnp.float32,
                                         min_pallas_elems=1 << 16):
    """Pallas equivalent of RandomOrLearnedSinusoidalPosEmb.forward.

    x:       (b,) float array of timesteps / noise levels.
    weights: (half_dim,) float array (the nn.Parameter).
    returns: (b, 2*half_dim + 1) = [x | sin(2*pi*x*w) | cos(2*pi*x*w)].
    """
    b = x.shape[0]
    half_dim = weights.shape[0]
    rows = 2 * half_dim + 1

    x_f32 = x.astype(jnp.float32)
    w_f32 = weights.astype(jnp.float32)

    # Small-problem fast path: let XLA fuse the expression into the consumer.
    if b * half_dim < min_pallas_elems:
        x2 = x_f32.reshape(b, 1)
        freqs = x2 * w_f32.reshape(1, half_dim) * _TWO_PI
        return jnp.concatenate([x2, jnp.sin(freqs), jnp.cos(freqs)],
                               axis=-1).astype(out_dtype)

    bt = _pick_batch_tile(b, rows)
    b_pad = _round_up(b, bt)

    x_row = x_f32.reshape(1, b)
    if b_pad != b:
        x_row = jnp.pad(x_row, ((0, 0), (0, b_pad - b)))
    w_col = w_f32.reshape(half_dim, 1)

    out_t = pl.pallas_call(
        _posemb_kernel,
        out_shape=jax.ShapeDtypeStruct((rows, b_pad), out_dtype),
        grid=(b_pad // bt,),
        in_specs=[
            pl.BlockSpec((1, bt), lambda i: (0, i)),           # batch on lanes
            pl.BlockSpec((half_dim, 1), lambda i: (0, 0)),     # resident weights
        ],
        out_specs=pl.BlockSpec((rows, bt), lambda i: (0, i)),  # fused x|sin|cos
        compiler_params=pltpu.CompilerParams(
            dimension_semantics=("parallel",),
            vmem_limit_bytes=32 << 20,
        ),
    )(x_row, w_col)

    # Single XLA transpose back to the module's (b, dim+1) layout (no concat).
    # Consumers that accept the transposed slab should use out_t directly.
    # TODO(synk): when half_dim is already a multiple of 128, a natural-layout
    # (batch-on-sublanes) kernel variant would avoid this transpose entirely.
    return out_t[:, :b].T


def _reference(x, weights):
    x2 = x.reshape(-1, 1).astype(jnp.float32)
    freqs = x2 * weights.reshape(1, -1).astype(jnp.float32) * _TWO_PI
    return jnp.concatenate([x2, jnp.sin(freqs), jnp.cos(freqs)], axis=-1)


if __name__ == "__main__":
    key = jax.random.PRNGKey(0)
    k_x, k_w = jax.random.split(key)

    batch = 8
    dim = 32            # module arg `dim`, must be even
    half_dim = dim // 2

    # Deterministic "parameter" init (torch.randn(half_dim) analogue).
    weights = jax.random.normal(k_w, (half_dim,), dtype=jnp.float32)
    # Noise levels in [0, 1) (keeps f32 sin/cos range reduction exact enough
    # for a tight comparison against the XLA reference).
    x = jax.random.uniform(k_x, (batch,), dtype=jnp.float32)

    # Force the Pallas path (the default heuristic routes toy sizes to XLA).
    out = random_or_learned_sinusoidal_pos_emb(x, weights, min_pallas_elems=0)
    out = jax.block_until_ready(out)

    ref = _reference(x, weights)
    assert out.shape == (batch, dim + 1), out.shape
    assert jnp.allclose(out, ref, atol=1e-5, rtol=1e-5), "pallas path mismatch vs reference"

    # Also exercise the small-problem XLA fast path.
    out_fast = jax.block_until_ready(random_or_learned_sinusoidal_pos_emb(x, weights))
    assert jnp.allclose(out_fast, ref, atol=1e-5, rtol=1e-5), "fast path mismatch vs reference"

    print("KERNEL_OK")
</pallas_src>

<mosaic_0001>
module attributes {stable_mosaic.version = 11 : i64} {
  func.func @_posemb_kernel(%arg0: i32, %arg1: memref<1x128xf32, #tpu.memory_space<vmem>>, %arg2: memref<16x1xf32, #tpu.memory_space<vmem>>, %arg3: memref<33x128xf32, #tpu.memory_space<vmem>>) attributes {dimension_semantics = [#tpu.dimension_semantics<parallel>], iteration_bounds = array<i64: 1>, scalar_prefetch = 0 : i64, scratch_operands = 0 : i64, tpu.core_type = #tpu.core_type<tc>, window_params = [{transform_indices = @transform_0, window_bounds = array<i64: 1, 128>}, {pipeline_mode = #tpu.pipeline_mode<synchronous>, transform_indices = @transform_1, window_bounds = array<i64: 16, 1>}, {transform_indices = @transform_2, window_bounds = array<i64: 33, 128>}]} {
    %c0 = arith.constant 0 : index
    %c0_0 = arith.constant 0 : index
    %0 = vector.load %arg1[%c0, %c0_0] : memref<1x128xf32, #tpu.memory_space<vmem>>, vector<1x128xf32>
    %c0_1 = arith.constant 0 : index
    %c0_2 = arith.constant 0 : index
    %1 = vector.load %arg2[%c0_1, %c0_2] : memref<16x1xf32, #tpu.memory_space<vmem>>, vector<16x1xf32>
    %cst = arith.constant 6.28318548 : f32
    %2 = vector.broadcast %cst : f32 to vector<16x1xf32>
    %3 = arith.mulf %1, %2 : vector<16x1xf32>
    %4 = vector.broadcast %3 : vector<16x1xf32> to vector<16x128xf32>
    %5 = vector.broadcast %0 : vector<1x128xf32> to vector<16x128xf32>
    %6 = arith.mulf %4, %5 : vector<16x128xf32>
    %c0_3 = arith.constant 0 : index
    %c0_4 = arith.constant 0 : index
    %7 = vector.load %arg3[%c0_3, %c0_4] : memref<33x128xf32, #tpu.memory_space<vmem>>, vector<1x128xf32>
    tpu.vector_store %arg3[%c0_3, %c0_4], %0 {strides = array<i32>} : memref<33x128xf32, #tpu.memory_space<vmem>>, vector<1x128xf32>,
    %8 = math.sin %6 : vector<16x128xf32>
    %c1 = arith.constant 1 : index
    %c0_5 = arith.constant 0 : index
    %9 = vector.load %arg3[%c1, %c0_5] : memref<33x128xf32, #tpu.memory_space<vmem>>, vector<16x128xf32>
    tpu.vector_store %arg3[%c1, %c0_5], %8 {strides = array<i32>} : memref<33x128xf32, #tpu.memory_space<vmem>>, vector<16x128xf32>,
    %10 = math.cos %6 : vector<16x128xf32>
    %c17 = arith.constant 17 : index
    %c0_6 = arith.constant 0 : index
    %11 = vector.load %arg3[%c17, %c0_6] : memref<33x128xf32, #tpu.memory_space<vmem>>, vector<16x128xf32>
    tpu.vector_store %arg3[%c17, %c0_6], %10 {strides = array<i32>} : memref<33x128xf32, #tpu.memory_space<vmem>>, vector<16x128xf32>,
    return
  }
  func.func @transform_0(%arg0: i32) -> (i32, i32) {
    %c0_i32 = arith.constant 0 : i32
    %c0_i32_0 = arith.constant 0 : i32
    return %c0_i32, %arg0 : i32, i32
  }
  func.func @transform_1(%arg0: i32) -> (i32, i32) {
    %c0_i32 = arith.constant 0 : i32
    %c0_i32_0 = arith.constant 0 : i32
    %c0_i32_1 = arith.constant 0 : i32
    return %c0_i32, %c0_i32_0 : i32, i32
  }
  func.func @transform_2(%arg0: i32) -> (i32, i32) {
    %c0_i32 = arith.constant 0 : i32
    %c0_i32_0 = arith.constant 0 : i32
    return %c0_i32, %arg0 : i32, i32
  }
}

</mosaic_0001>

<bundles_post_ra>
// kernel: tpu_custom_call.1
= control target key start
LH: loop header
LB: loop body
LE: loop exit
PB: predicated region body
PF: predicated region fallthrough
CT: control target
= control target key end

     0   :  { %v537_v2 = vmov 0   ;;  %s643_s0 = inlined_call_operand.vmem [shape: f32[1,128], index: 0, kind: input, shape index: {}]   ;;  %s644_s1 = inlined_call_operand.vmem [shape: f32[16,1], index: 1, kind: input, shape index: {}]   ;;  %s645_s2 = inlined_call_operand.hbm [shape: f32[33,128], index: 2, kind: output, shape index: {}]  }
   0x1   :  { %v13_v0 = vld [vmem:[%s644_s1] sm:$0xff]  ;;  %v14_v1 = vld [vmem:[%s644_s1 + $0x8] sm:$0xff]  ;;  %504 = vset.pattern.permute.xlu0 %v537_v2 }
   0x2   :  { %v15_v3 = vmul.f32 6.2831855, %v13_v0  ;;  %v16_v4 = vmul.f32 6.2831855, %v14_v1  ;;  %v12_v5 = vld [vmem:[%s643_s0] sm:$0x1] }
   0x3   :  { %35 = vst [vmem:[#allocation2] sm:$0x1] %v12_v5 }
   0x4   :  { %19 = vperm.xlu0 %504, %v15_v3  }
   0x5   :  { %7 = vsyncpa [#allocation3], 0  ;;  %v28_v6 = vlaneseq  ;;  %v538_v30 = vmov 683565275   ;;  %v539_v34 = vmov 2475754826  }
   0x6   :  { %v540_v36 = vmov 2131351028   ;;  %v541_v38 = vmov 2102212464   ;;  %v542_v40 = vmov 920167782  }
   0x7   :  { %v29_v7 = vshrl.u32 %v28_v6, 7  ;;  %v543_v47 = vmov 1326507024   ;;  %s544_s0 = smov [#allocation2]  }
   0x8   :  { %24 = vperm.xlu0 %504, %v16_v4   ;;  %s459_s1 = sshll.u32 %s544_s0, 4  ;;  %s460_s1 = int_to_ptr.vmem [resolvable:$true] %s459_s1 }
   0x9   :  { %v30_v8 = vsub.s32 0, %v29_v7  ;;  %s513_s15 = scalar_lea.vmem %s460_s1, 640  ;;  %p518_p1 = scmp.lt.s32.totalorder %s460_s1, %s460_s1 }
   0xa   :  { %p514_p0 = scmp.ne.s32.totalorder %s460_s1, %s513_s15  ;;  %p519_p2 = scmp.lt.s32.totalorder %s513_s15, %s513_s15 }
   0xb   :  { %v31_v9 = vrot.slane %v12_v5, %v30_v8 }
   0xc   :  { %p520_p3 = por %p519_p2, %p518_p1 }
   0xe   :  { %p521_p4 = pnand %p520_p3, %p514_p0 }
  0x83   :  { %v20_v10 = vpop.permute.xlu0 %19 }
  0x84   :  { %v571_v11 = vmul.f32 %v31_v9, %v20_v10 }
  0x86   :  { %v36_v12 = vand.u32 2147483647, %v571_v11  ;;  %v39_v13 = vand.u32 2139095040, %v571_v11  ;;  %vm38_vm14 = vcmp.lt.s32.totalorder %v571_v11, 0 }
  0x87   :  { %v25_v14 = vpop.permute.xlu0 %24 }
  0x88   :  { %v40_v15 = vshrl.u32 %v39_v13, 23  ;;  %v575_v16 = vmul.f32 %v31_v9, %v25_v14  ;;  %v43_v17 = vand.u32 8388607, %v36_v12  ;;  %vm37_vm15 = vcmp.le.f32.partialorder %v36_v12, 0.7853982 }
  0x8a   :  { %v470_v18 = vadd.s32 4294967169, %v40_v15  ;;  %v143_v19 = vand.u32 2139095040, %v575_v16  ;;  %v44_v21 = vor.u32 8388608, %v43_v17  ;;  %v140_v23 = vand.u32 2147483647, %v575_v16 }
  0x8c   :  { %v46_v20 = vadd.s32 1, %v470_v18  ;;  %v144_v22 = vshrl.u32 %v143_v19, 23  ;;  %v581_v28 = vshll.u32 %v44_v21, 8  ;;  %v147_v32 = vand.u32 8388607, %v140_v23 }
  0x8e   :  { %vm47_vm0 = vcmp.gt.s32.totalorder %v46_v20, 0  ;;  %v474_v25 = vadd.s32 4294967169, %v144_v22  ;;  %v148_v62 = vor.u32 8388608, %v147_v32 }
  0x8f   :  { %v48_v24 = vsel %vm47_vm0, %v46_v20, 0  ;;  %vm142_vm0 = vcmp.lt.s32.totalorder %v575_v16, 0 }
  0x90   :  { %v49_v26 = vshrl.u32 %v48_v24, 5  ;;  %v50_v27 = vand.u32 31, %v48_v24  ;;  %v150_v33 = vadd.s32 1, %v474_v25  ;;  %v188_v13 = vshll.u32 %v148_v62, 8 }
  0x92   :  { %v51_v29 = vsub.s32 32, %v50_v27  ;;  %v53_v31 = vshll.u32 %v538_v30, %v50_v27  ;;  %v56_v35 = vshll.u32 %v539_v34, %v50_v27  ;;  %v59_v37 = vshll.u32 %v540_v36, %v50_v27 }
  0x93   :  { %v62_v39 = vshll.u32 %v541_v38, %v50_v27  ;;  %v65_v41 = vshll.u32 %v542_v40, %v50_v27  ;;  %vm68_vm1 = vcmp.lt.s32.totalorder %v49_v26, 1  ;;  %vm70_vm2 = vcmp.lt.s32.totalorder %v49_v26, 3 }
  0x94   :  { %v54_v42 = vshrl.u32 %v539_v34, %v51_v29  ;;  %v57_v43 = vshrl.u32 %v540_v36, %v51_v29  ;;  %v60_v44 = vshrl.u32 %v541_v38, %v51_v29  ;;  %v52_v45 = vshrl.u32 %v538_v30, %v51_v29 }
  0x95   :  { %v63_v46 = vshrl.u32 %v542_v40, %v51_v29  ;;  %v66_v48 = vshrl.u32 %v543_v47, %v51_v29  ;;  %vm151_vm3 = vcmp.gt.s32.totalorder %v150_v33, 0  ;;  %vm71_vm4 = vcmp.lt.s32.totalorder %v49_v26, 4 }
  0x96   :  { %v55_v49 = vor.u32 %v54_v42, %v53_v31  ;;  %v58_v50 = vor.u32 %v57_v43, %v56_v35  ;;  %v61_v51 = vor.u32 %v60_v44, %v59_v37  ;;  %v152_v54 = vsel %vm151_vm3, %v150_v33, 0 }
  0x97   :  { %v64_v52 = vor.u32 %v63_v46, %v62_v39  ;;  %v67_v53 = vor.u32 %v66_v48, %v65_v41  ;;  %vm69_vm5 = vcmp.lt.s32.totalorder %v49_v26, 2  ;;  %v154_v1 = vand.u32 31, %v152_v54 }
  0x98   :  { %v72_v55 = vsel %vm68_vm1, %v52_v45, %v55_v49  ;;  %v73_v56 = vsel %vm71_vm4, %v61_v51, 2102212464  ;;  %v76_v57 = vsel %vm68_vm1, %v55_v49, %v58_v50  ;;  %v80_v58 = vsel %vm68_vm1, %v58_v50, %v61_v51 }
  0x99   :  { %v74_v59 = vsel %vm70_vm2, %v58_v50, %v73_v56  ;;  %v77_v60 = vsel %vm71_vm4, %v64_v52, 920167782  ;;  %v81_v61 = vsel %vm71_vm4, %v67_v53, 1326507024  ;;  %v153_v9 = vshrl.u32 %v152_v54, 5 }
  0x9a   :  { %v78_v63 = vsel %vm70_vm2, %v61_v51, %v77_v60  ;;  %v82_v0 = vsel %vm70_vm2, %v64_v52, %v81_v61  ;;  %v75_v2 = vsel %vm69_vm5, %v72_v55, %v74_v59  ;;  %v155_v10 = vsub.s32 32, %v154_v1 }
  0x9b   :  { %v79_v3 = vsel %vm69_vm5, %v76_v57, %v78_v63  ;;  %v83_v4 = vsel %vm69_vm5, %v80_v58, %v82_v0  ;;  %v91_v14 = vmul.u32 %v581_v28, %v75_v2  ;;  %v157_v15 = vshll.u32 %v538_v30, %v154_v1 }
  0x9c   :  { %v594_v5 = vmul.u32.u64.low %v581_v28, %v83_v4  ;;  %v595_v6 = vmul.u32.u64.high %v581_v28, %v83_v4, %v594_v5  ;;  %v598_v7 = vmul.u32.u64.low %v581_v28, %v79_v3  ;;  %v599_v8 = vmul.u32.u64.high %v581_v28, %v79_v3, %v598_v7 }
  0x9d   :  { %v160_v17 = vshll.u32 %v539_v34, %v154_v1  ;;  %v163_v18 = vshll.u32 %v540_v36, %v154_v1  ;;  %v158_v19 = vshrl.u32 %v539_v34, %v155_v10  ;;  %v161_v20 = vshrl.u32 %v540_v36, %v155_v10 }
  0x9e   :  { %v164_v21 = vshrl.u32 %v541_v38, %v155_v10  ;;  %v166_v22 = vshll.u32 %v541_v38, %v154_v1  ;;  %vm93_vm6 = vc.u32 %v595_v6, %v598_v7  ;;  %v94_v24 = vadd.s32 1, %v599_v8 }
  0x9f   :  { %v167_v25 = vshrl.u32 %v542_v40, %v155_v10  ;;  %v169_v26 = vshll.u32 %v542_v40, %v154_v1  ;;  %v159_v27 = vor.u32 %v158_v19, %v157_v15  ;;  %v162_v29 = vor.u32 %v161_v20, %v160_v17 }
  0xa0   :  { %v165_v31 = vor.u32 %v164_v21, %v163_v18  ;;  %v170_v32 = vshrl.u32 %v543_v47, %v155_v10  ;;  %v95_v28 = vsel %vm93_vm6, %v94_v24, %v599_v8  ;;  %vm172_vm7 = vcmp.lt.s32.totalorder %v153_v9, 1 }
  0xa1   :  { %v168_v33 = vor.u32 %v167_v25, %v166_v22  ;;  %vm175_vm8 = vcmp.lt.s32.totalorder %v153_v9, 4  ;;  %v96_v34 = vadd.s32 %v95_v28, %v91_v14  ;;  %vm174_vm9 = vcmp.lt.s32.totalorder %v153_v9, 3 }
  0xa2   :  { %v171_v35 = vor.u32 %v170_v32, %v169_v26  ;;  %v177_v36 = vsel %vm175_vm8, %v165_v31, 2102212464  ;;  %v156_v37 = vshrl.u32 %v538_v30, %v155_v10  ;;  %v180_v38 = vsel %vm172_vm7, %v159_v27, %v162_v29 }
  0xa3   :  { %v181_v39 = vsel %vm175_vm8, %v168_v33, 920167782  ;;  %v184_v41 = vsel %vm172_vm7, %v162_v29, %v165_v31  ;;  %v97_v42 = vadd.s32 536870912, %v96_v34  ;;  %vm173_vm10 = vcmp.lt.s32.totalorder %v153_v9, 2 }
  0xa4   :  { %v182_v40 = vsel %vm174_vm9, %v165_v31, %v181_v39  ;;  %v185_v43 = vsel %vm175_vm8, %v171_v35, 1326507024  ;;  %v176_v44 = vsel %vm172_vm7, %v156_v37, %v159_v27  ;;  %v178_v45 = vsel %vm174_vm9, %v162_v29, %v177_v36 }
  0xa5   :  { %v183_v46 = vsel %vm173_vm10, %v180_v38, %v182_v40  ;;  %v186_v47 = vsel %vm174_vm9, %v168_v33, %v185_v43  ;;  %v98_v48 = vshrl.u32 %v97_v42, 30  ;;  %v179_v54 = vsel %vm173_vm10, %v176_v44, %v178_v45 }
  0xa6   :  { %v187_v49 = vsel %vm173_vm10, %v184_v41, %v186_v47  ;;  %v609_v50 = vmul.u32.u64.low %v188_v13, %v183_v46  ;;  %v610_v51 = vmul.u32.u64.high %v188_v13, %v183_v46, %v609_v50  ;;  %v195_v57 = vmul.u32 %v188_v13, %v179_v54 }
  0xa7   :  { %v612_v52 = vmul.u32.u64.low %v188_v13, %v187_v49  ;;  %v613_v53 = vmul.u32.u64.high %v188_v13, %v187_v49, %v612_v52  ;;  %v99_v30 = vshll.u32 %v98_v48, 30  ;;  %v92_v5 = vadd.s32 %v598_v7, %v595_v6 }
  0xa8   :  { %v198_v56 = vadd.s32 1, %v610_v51  ;;  %v122_v27 = vsub.s32 4, %v98_v48  ;;  %vm141_vm1 = vcmp.le.f32.partialorder %v140_v23, 0.7853982  ;;  %vm128_vm8 = vweird.f32 %v571_v11 }
  0xa9   :  { %v100_v55 = vsub.s32 %v96_v34, %v99_v30  ;;  %vm197_vm11 = vc.u32 %v613_v53, %v609_v50  ;;  %v196_v6 = vadd.s32 %v609_v50, %v613_v53 }
  0xaa   :  { %v199_v59 = vsel %vm197_vm11, %v198_v56, %v610_v51  ;;  %v123_v36 = vsel %vm38_vm14, %v122_v27, %v98_v48 }
  0xab   :  { %v102_v58 = vsub.s32 0, %v100_v55  ;;  %v200_v60 = vadd.s32 %v199_v59, %v195_v57  ;;  %v125_v41 = vsel %vm37_vm15, 0, %v123_v36 }
  0xac   :  { %v129_v44 = vadd.s32 3, %v125_v41  ;;  %v339_v47 = vand.u32 3, %v125_v41 }
  0xad   :  { %v471_v61 = vmin.u32 %v102_v58, %v100_v55  ;;  %v201_v62 = vadd.s32 536870912, %v200_v60 }
  0xae   :  { %v130_v50 = vand.u32 3, %v129_v44  ;;  %vm344_vm2 = vcmp.eq.s32.totalorder %v339_v47, 2  ;;  %vm341_vm5 = vcmp.eq.s32.totalorder %v339_v47, 0  ;;  %vm340_vm7 = vcmp.lt.s32.totalorder %v339_v47, 2 }
  0xaf   :  { %v104_v63 = vclz %v471_v61  ;;  %v202_v0 = vshrl.u32 %v201_v62, 30 }
  0xb0   :  { %vm135_vm3 = vcmp.eq.s32.totalorder %v130_v50, 2  ;;  %vm132_vm4 = vcmp.eq.s32.totalorder %v130_v50, 0  ;;  %vm131_vm6 = vcmp.lt.s32.totalorder %v130_v50, 2 }
  0xb1   :  { %v472_v1 = vadd.s32 4294967294, %v104_v63  ;;  %v203_v2 = vshll.u32 %v202_v0, 30  ;;  %v226_v46 = vsub.s32 4, %v202_v0 }
  0xb3   :  { %vm473_vm12 = vcmp.lt.s32.totalorder %v472_v1, 0  ;;  %v204_v4 = vsub.s32 %v200_v60, %v203_v2  ;;  %v227_v48 = vsel %vm142_vm0, %v226_v46, %v202_v0 }
  0xb4   :  { %v107_v3 = vsel %vm473_vm12, 0, %v472_v1 }
  0xb5   :  { %v108_v8 = vsub.s32 32, %v107_v3  ;;  %v112_v9 = vsub.s32 4294967266, %v107_v3  ;;  %v206_v10 = vsub.s32 0, %v204_v4  ;;  %v109_v13 = vshll.u32 %v100_v55, %v107_v3 }
  0xb6   :  { %v229_v55 = vsel %vm141_vm1, 0, %v227_v48 }
  0xb7   :  { %v110_v14 = vshrl.u32 %v92_v5, %v108_v8  ;;  %v113_v15 = vadd.s32 127, %v112_v9  ;;  %v475_v17 = vmin.u32 %v206_v10, %v204_v4  ;;  %v233_v61 = vadd.s32 3, %v229_v55 }
  0xb8   :  { %v442_v1 = vand.u32 3, %v229_v55 }
  0xb9   :  { %v111_v18 = vor.u32 %v110_v14, %v109_v13  ;;  %v114_v19 = vshll.u32 %v113_v15, 23  ;;  %v208_v20 = vclz %v475_v17  ;;  %v234_v0 = vand.u32 3, %v233_v61 }
  0xba   :  { %vm447_vm10 = vcmp.eq.s32.totalorder %v442_v1, 2  ;;  %vm444_vm12 = vcmp.eq.s32.totalorder %v442_v1, 0 }
  0xbb   :  { %v115_v21 = vor.u32 4788187, %v114_v19  ;;  %v476_v22 = vadd.s32 4294967294, %v208_v20  ;;  %v118_v25 = vcvt.s32.f32 %v111_v18  ;;  %vm239_vm9 = vcmp.eq.s32.totalorder %v234_v0, 2 }
  0xbc   :  { %vm236_vm11 = vcmp.eq.s32.totalorder %v234_v0, 0 }
  0xbd   :  { %v116_v24 = vand.u32 2147483647, %v115_v21  ;;  %vm477_vm13 = vcmp.lt.s32.totalorder %v476_v22, 0 }
  0xbe   :  { %v211_v29 = vsel %vm477_vm13, 0, %v476_v22  ;;  %vm235_vm13 = vcmp.lt.s32.totalorder %v234_v0, 2 }
  0xbf   :  { %v119_v26 = vmul.f32 %v118_v25, %v116_v24  ;;  %v212_v7 = vsub.s32 32, %v211_v29  ;;  %v216_v31 = vsub.s32 4294967266, %v211_v29  ;;  %v213_v28 = vshll.u32 %v204_v4, %v211_v29 }
  0xc1   :  { %v120_v32 = vxor.u32 2147483648, %v119_v26  ;;  %v214_v33 = vshrl.u32 %v196_v6, %v212_v7  ;;  %v217_v34 = vadd.s32 127, %v216_v31 }
  0xc3   :  { %v121_v35 = vsel %vm38_vm14, %v120_v32, %v119_v26  ;;  %v215_v38 = vor.u32 %v214_v33, %v213_v28  ;;  %v218_v39 = vshll.u32 %v217_v34, 23  ;;  %vm443_vm14 = vcmp.lt.s32.totalorder %v442_v1, 2 }
  0xc4   :  { %v124_v37 = vsel %vm37_vm15, %v571_v11, %v121_v35  ;;  %vm232_vm15 = vweird.f32 %v575_v16 }
  0xc5   :  { %505 = vcosq.f32 %v124_v37  ;;  %v219_v42 = vor.u32 4788187, %v218_v39  ;;  %v222_v43 = vcvt.s32.f32 %v215_v38 }
  0xc6   :  { %507 = vsinq.f32 %v124_v37 }
  0xc7   :  { %v220_v40 = vand.u32 2147483647, %v219_v42 }
  0xc9   :  { %v223_v45 = vmul.f32 %v222_v43, %v220_v40 }
  0xcb   :  { %v224_v49 = vxor.u32 2147483648, %v223_v45 }
  0xcd   :  { %v225_v12 = vsel %vm142_vm0, %v224_v49, %v223_v45 }
  0xce   :  { %v228_v52 = vsel %vm141_vm1, %v575_v16, %v225_v12 }
  0xcf   :  { %v506_v51 = vpop.eup %505  ;;  %509 = vcosq.f32 %v228_v52 }
  0xd0   :  { %v508_v53 = vpop.eup %507  ;;  %v136_v30 = vxor.u32 2147483648, %v506_v51  ;;  %511 = vsinq.f32 %v228_v52 }
  0xd1   :  { %v133_v54 = vxor.u32 2147483648, %v508_v53 }
  0xd2   :  { %v137_v56 = vsel %vm135_vm3, %v136_v30, %v508_v53  ;;  %v346_v57 = vsel %vm344_vm2, %v136_v30, %v508_v53 }
  0xd3   :  { %v134_v58 = vsel %vm132_vm4, %v506_v51, %v133_v54  ;;  %v343_v23 = vsel %vm341_vm5, %v506_v51, %v133_v54 }
  0xd4   :  { %v138_v59 = vsel %vm131_vm6, %v134_v58, %v137_v56  ;;  %v347_v60 = vsel %vm340_vm7, %v343_v23, %v346_v57 }
  0xd5   :  { %v139_v62 = vsel %vm128_vm8, nan, %v138_v59  ;;  %v348_v63 = vsel %vm128_vm8, nan, %v347_v60 }
  0xd6   :  { %244 = vst [vmem:[#allocation2 + $0x1] sm:$0xff] %v139_v62  ;;  %452 = vst [vmem:[#allocation2 + $0x11] sm:$0xff] %v348_v63 }
  0xd9   :  { %v510_v2 = vpop.eup %509 }
  0xda   :  { %v512_v3 = vpop.eup %511  ;;  %v240_v4 = vxor.u32 2147483648, %v510_v2 }
  0xdb   :  { %v237_v5 = vxor.u32 2147483648, %v512_v3 }
  0xdc   :  { %v241_v8 = vsel %vm239_vm9, %v240_v4, %v512_v3  ;;  %v449_v11 = vsel %vm447_vm10, %v240_v4, %v512_v3 }
  0xdd   :  { %v238_v9 = vsel %vm236_vm11, %v510_v2, %v237_v5  ;;  %v446_v10 = vsel %vm444_vm12, %v510_v2, %v237_v5 }
  0xde   :  { %v242_v13 = vsel %vm235_vm13, %v238_v9, %v241_v8  ;;  %v450_v14 = vsel %vm443_vm14, %v446_v10, %v449_v11 }
  0xdf   :  { %v243_v15 = vsel %vm232_vm15, nan, %v242_v13  ;;  %v451_v17 = vsel %vm232_vm15, nan, %v450_v14 }
  0xe0   :  { %245 = vst [vmem:[#allocation2 + $0x9] sm:$0xff] %v243_v15  ;;  %453 = vst [vmem:[#allocation2 + $0x19] sm:$0xff] %v451_v17 }
  0xe1   :  { %524 = shalt.err (!%p521_p4)
}
  0xe2   :  { %s525_s18 = scalar_lea.hbm %s645_s2, 640 }
  0xe3   :  { %p526_p5 = scmp.ne.s32.totalorder %s645_s2, %s525_s18  ;;  %p529_p6 = scmp.lt.u32.totalorder %s525_s18, %s645_s2 }
  0xe5   :  { %p531_p7 = pnand %p529_p6, %p526_p5 }
  0xe7   :  { %534 = shalt.err (!%p531_p7)
}
  0xe8   :  { %s545_s23 = smov 128   ;;  %s546_s24 = smov 8  }
  0xe9   :  { %465 = dma.vmem_to_hbm [thread:$0]  %s460_s1, 640, %s645_s2, [#allocation3], %s545_s23, %s545_s23, %s546_s24  }
  0xea   :  { %535 = dma.done.wait [#allocation3], 640  }
  0xeb   :  { %536 = vsyncadd [#allocation3], 4294966656 }
  0xec   :  { %469 = vsyncpa [#allocation3], 1 }

</bundles_post_ra>
